<compile_context>
chip_gen: v7x
topology: tpu7x:2x2x1
jax: 0.10.0
libtpu: 0.0.40
codegen_flags: <defaults>
</compile_context>

<pallas_src>
import jax
import jax.numpy as jnp
from jax.experimental import pallas as pl
from jax.experimental.pallas import tpu as pltpu

H1 = 16   # fc1 out features
H2 = 8    # fc2 out features

# Row layout of the packed parameter slab (all sections start on 8-row tiles).
_W1_R0, _W1_R1 = 0, 16    # W1  (16, S)
_W2_R0, _W2_R1 = 16, 24   # W2  (8, 16)
_W3_R0, _W3_R1 = 24, 32   # W3 column (8, 1)
_B1_R0, _B1_R1 = 32, 48   # b1  (16, 1)
_B2_R0, _B2_R1 = 48, 56   # b2  (8, 1)
_B3_R0, _B3_R1 = 56, 57   # b3  (1, 1)
_SLAB_ROWS = 64


def critic_kernel(x_ref, p_ref, o_ref):
    # x_ref: (S, TB)  -- batch on lanes.  p_ref: (64, C) packed params.
    S = x_ref.shape[0]
    xT = x_ref[...]                                   # (S, TB)

    w1 = p_ref[_W1_R0:_W1_R1, 0:S]                    # (16, S)
    w2 = p_ref[_W2_R0:_W2_R1, 0:H1]                   # (8, 16)
    w3c = p_ref[_W3_R0:_W3_R1, 0:1]                   # (8, 1)
    b1 = p_ref[_B1_R0:_B1_R1, 0:1]                    # (16, 1)
    b2 = p_ref[_B2_R0:_B2_R1, 0:1]                    # (8, 1)
    b3 = p_ref[_B3_R0:_B3_R1, 0:1]                    # (1, 1)

    # fc1 + ReLU   (MXU, lane-dense activations)
    h1 = jnp.dot(w1, xT, preferred_element_type=jnp.float32) + b1
    h1 = jnp.maximum(h1, 0.0)                         # (16, TB)
    # fc2 + ReLU
    h2 = jnp.dot(w2, h1, preferred_element_type=jnp.float32) + b2
    h2 = jnp.maximum(h2, 0.0)                         # (8, TB)
    # q_value: 1-wide output -> VPU mul + sublane reduce instead of MXU matmul
    o_ref[...] = jnp.sum(w3c * h2, axis=0, keepdims=True) + b3   # (1, TB)


def critic_forward(state, packed_params, *, tile_b=512):
    """state: (B, state_size) float32 -> (B, 1) float32."""
    B, S = state.shape
    # Layout plumbing: put batch on the lane axis. Callers that already store
    # rollouts feature-major can pass (S, B) and skip this transpose.
    xT = state.T                                      # (S, B)

    TB = B if B <= tile_b else tile_b                 # TB==B: full-dim block (exempt
    grid = (pl.cdiv(B, TB),)                          # from the (8,128) rule); else 512.

    out = pl.pallas_call(
        critic_kernel,
        out_shape=jax.ShapeDtypeStruct((1, B), jnp.float32),
        grid=grid,
        in_specs=[
            pl.BlockSpec((S, TB), lambda i: (0, i)),               # state tile
            pl.BlockSpec(packed_params.shape, lambda i: (0, 0)),   # params: VMEM-resident
        ],
        out_specs=pl.BlockSpec((1, TB), lambda i: (0, i)),         # lane-dense output
        compiler_params=pltpu.CompilerParams(
            dimension_semantics=("parallel",)),                    # 2 TCs on v7x
    )(xT, packed_params)

    return out.reshape(B, 1)   # (1,B) -> (B,1) is a pure (free) reshape


def init_params(key, state_size):
    """nn.Linear-style init (uniform +-1/sqrt(fan_in)), PyTorch (out,in) layout."""
    def linear(key, fan_in, fan_out):
        kw, kb = jax.random.split(key)
        bound = 1.0 / float(fan_in) ** 0.5
        w = jax.random.uniform(kw, (fan_out, fan_in), jnp.float32, -bound, bound)
        b = jax.random.uniform(kb, (fan_out,), jnp.float32, -bound, bound)
        return w, b

    k1, k2, k3 = jax.random.split(key, 3)
    w1, b1 = linear(k1, state_size, H1)
    w2, b2 = linear(k2, H1, H2)
    w3, b3 = linear(k3, H2, 1)
    return (w1, b1, w2, b2, w3, b3)


def pack_params(params, state_size):
    """Pack the 6 tensors into one (64, C) fp32 slab (done once, outside the kernel)."""
    w1, b1, w2, b2, w3, b3 = params
    C = max(state_size, H1)
    slab = jnp.zeros((_SLAB_ROWS, C), jnp.float32)
    slab = slab.at[_W1_R0:_W1_R1, 0:state_size].set(w1)        # (16, S)
    slab = slab.at[_W2_R0:_W2_R1, 0:H1].set(w2)                # (8, 16)
    slab = slab.at[_W3_R0:_W3_R1, 0:1].set(w3.T)               # (8, 1)
    slab = slab.at[_B1_R0:_B1_R1, 0:1].set(b1[:, None])        # (16, 1)
    slab = slab.at[_B2_R0:_B2_R1, 0:1].set(b2[:, None])        # (8, 1)
    slab = slab.at[_B3_R0:_B3_R1, 0:1].set(b3[:, None])        # (1, 1)
    return slab


def critic_ref(state, params):
    """Pure-JAX reference matching the PyTorch forward."""
    w1, b1, w2, b2, w3, b3 = params
    x = jnp.maximum(state @ w1.T + b1, 0.0)
    x = jnp.maximum(x @ w2.T + b2, 0.0)
    # final layer written elementwise (mathematically identical to x @ w3.T + b3,
    # and exact fp32 like the kernel's VPU path)
    return jnp.sum(x * w3, axis=-1, keepdims=True) + b3


if __name__ == "__main__":
    key = jax.random.PRNGKey(0)
    k_param, k_state, k_big = jax.random.split(key, 3)

    state_size = 4   # CartPole observation dim
    params = init_params(k_param, state_size)
    slab = pack_params(params, state_size)

    # Small batch (typical single A2C step): one grid point, full-dim blocks.
    batch = 8
    state = jax.random.normal(k_state, (batch, state_size), jnp.float32)
    out = jax.block_until_ready(critic_forward(state, slab))
    ref = critic_ref(state, params)
    assert out.shape == (batch, 1), out.shape
    assert jnp.allclose(out, ref, atol=1e-4, rtol=1e-4), (out, ref)

    # Larger batch exercises the tiled, lane-dense, "parallel" grid path.
    big_batch = 1024
    state_big = jax.random.normal(k_big, (big_batch, state_size), jnp.float32)
    out_big = jax.block_until_ready(critic_forward(state_big, slab))
    ref_big = critic_ref(state_big, params)
    assert out_big.shape == (big_batch, 1), out_big.shape
    assert jnp.allclose(out_big, ref_big, atol=1e-4, rtol=1e-4)

    print("KERNEL_OK")
</pallas_src>

<mosaic_0001>
module attributes {stable_mosaic.version = 11 : i64} {
  func.func @critic_kernel(%arg0: i32, %arg1: memref<4x8xf32, #tpu.memory_space<vmem>>, %arg2: memref<64x16xf32, #tpu.memory_space<vmem>>, %arg3: memref<1x8xf32, #tpu.memory_space<vmem>>) attributes {dimension_semantics = [#tpu.dimension_semantics<parallel>], iteration_bounds = array<i64: 1>, scalar_prefetch = 0 : i64, scratch_operands = 0 : i64, tpu.core_type = #tpu.core_type<tc>, window_params = [{transform_indices = @transform_0, window_bounds = array<i64: 4, 8>}, {pipeline_mode = #tpu.pipeline_mode<synchronous>, transform_indices = @transform_1, window_bounds = array<i64: 64, 16>}, {transform_indices = @transform_2, window_bounds = array<i64: 1, 8>}]} {
    %c0 = arith.constant 0 : index
    %c0_0 = arith.constant 0 : index
    %0 = vector.load %arg1[%c0, %c0_0] : memref<4x8xf32, #tpu.memory_space<vmem>>, vector<4x8xf32>
    %c0_1 = arith.constant 0 : index
    %c0_2 = arith.constant 0 : index
    %1 = vector.load %arg2[%c0_1, %c0_2] : memref<64x16xf32, #tpu.memory_space<vmem>>, vector<16x4xf32>
    %c16 = arith.constant 16 : index
    %c0_3 = arith.constant 0 : index
    %2 = vector.load %arg2[%c16, %c0_3] : memref<64x16xf32, #tpu.memory_space<vmem>>, vector<8x16xf32>
    %c24 = arith.constant 24 : index
    %c0_4 = arith.constant 0 : index
    %3 = vector.load %arg2[%c24, %c0_4] : memref<64x16xf32, #tpu.memory_space<vmem>>, vector<8x1xf32>
    %c32 = arith.constant 32 : index
    %c0_5 = arith.constant 0 : index
    %4 = vector.load %arg2[%c32, %c0_5] : memref<64x16xf32, #tpu.memory_space<vmem>>, vector<16x1xf32>
    %c48 = arith.constant 48 : index
    %c0_6 = arith.constant 0 : index
    %5 = vector.load %arg2[%c48, %c0_6] : memref<64x16xf32, #tpu.memory_space<vmem>>, vector<8x1xf32>
    %c56 = arith.constant 56 : index
    %c0_7 = arith.constant 0 : index
    %6 = vector.load %arg2[%c56, %c0_7] : memref<64x16xf32, #tpu.memory_space<vmem>>, vector<1x1xf32>
    %cst = arith.constant dense<0.000000e+00> : vector<16x8xf32>
    %7 = tpu.matmul %1, %0, %cst {dimension_numbers = #tpu.dot_dimension_numbers<[1], [0], [0], [1], [0, 0, 1, 1], [], []>} : vector<16x4xf32>, vector<4x8xf32>, vector<16x8xf32> -> vector<16x8xf32>
    %8 = vector.broadcast %4 : vector<16x1xf32> to vector<16x8xf32>
    %9 = arith.addf %7, %8 : vector<16x8xf32>
    %cst_8 = arith.constant 0.000000e+00 : f32
    %10 = vector.broadcast %cst_8 : f32 to vector<16x8xf32>
    %11 = arith.maximumf %9, %10 : vector<16x8xf32>
    %cst_9 = arith.constant dense<0.000000e+00> : vector<8x8xf32>
    %12 = tpu.matmul %2, %11, %cst_9 {dimension_numbers = #tpu.dot_dimension_numbers<[1], [0], [0], [1], [0, 0, 1, 1], [], []>} : vector<8x16xf32>, vector<16x8xf32>, vector<8x8xf32> -> vector<8x8xf32>
    %13 = vector.broadcast %5 : vector<8x1xf32> to vector<8x8xf32>
    %14 = arith.addf %12, %13 : vector<8x8xf32>
    %cst_10 = arith.constant 0.000000e+00 : f32
    %15 = vector.broadcast %cst_10 : f32 to vector<8x8xf32>
    %16 = arith.maximumf %14, %15 : vector<8x8xf32>
    %17 = vector.broadcast %3 : vector<8x1xf32> to vector<8x8xf32>
    %18 = arith.mulf %17, %16 : vector<8x8xf32>
    %cst_11 = arith.constant dense<0.000000e+00> : vector<8xf32>
    %19 = vector.multi_reduction <add>, %18, %cst_11 [0] : vector<8x8xf32> to vector<8xf32>
    %20 = vector.shape_cast %19 : vector<8xf32> to vector<1x8xf32>
    %21 = vector.broadcast %6 : vector<1x1xf32> to vector<1x8xf32>
    %22 = arith.addf %20, %21 : vector<1x8xf32>
    %c0_12 = arith.constant 0 : index
    %c0_13 = arith.constant 0 : index
    %23 = vector.load %arg3[%c0_12, %c0_13] : memref<1x8xf32, #tpu.memory_space<vmem>>, vector<1x8xf32>
    tpu.vector_store %arg3[%c0_12, %c0_13], %22 {strides = array<i32>} : memref<1x8xf32, #tpu.memory_space<vmem>>, vector<1x8xf32>,
    return
  }
  func.func @transform_0(%arg0: i32) -> (i32, i32) {
    %c0_i32 = arith.constant 0 : i32
    %c0_i32_0 = arith.constant 0 : i32
    return %c0_i32, %arg0 : i32, i32
  }
  func.func @transform_1(%arg0: i32) -> (i32, i32) {
    %c0_i32 = arith.constant 0 : i32
    %c0_i32_0 = arith.constant 0 : i32
    %c0_i32_1 = arith.constant 0 : i32
    return %c0_i32, %c0_i32_0 : i32, i32
  }
  func.func @transform_2(%arg0: i32) -> (i32, i32) {
    %c0_i32 = arith.constant 0 : i32
    %c0_i32_0 = arith.constant 0 : i32
    return %c0_i32, %arg0 : i32, i32
  }
}

</mosaic_0001>

<bundles_post_ra>
// kernel: tpu_custom_call.1
= control target key start
LH: loop header
LB: loop body
LE: loop exit
PB: predicated region body
PF: predicated region fallthrough
CT: control target
= control target key end

     0   :  { %vm38_vm0 = vcmask 1043456   ;;  %vm31_vm1 = vcmask 31744   ;;  %v291_v4 = vmov 0   ;;  %s350_s0 = inlined_call_operand.vmem [shape: f32[4,8], index: 0, kind: input, shape index: {}]   ;;  %s351_s1 = inlined_call_operand.vmem [shape: f32[64,16], index: 1, kind: input, shape index: {}]   ;;  %s352_s2 = inlined_call_operand.hbm [shape: f32[1,8], index: 2, kind: output, shape index: {}]  }
   0x1   :  { %v12_v0 = vld [vmem:[%s350_s0] sm:$0xf]  ;;  %v14_v2 = vld [vmem:[%s351_s1 + $0x8] sm:$0xff]  ;;  %265 = vset.pattern.permute.xlu0 %v291_v4 }
   0x2   :  { %v13_v1 = vld [vmem:[%s351_s1] sm:$0xff]  ;;  %245 = vmatprep.subr.msk.mxu0 %vm38_vm0, %v12_v0 }
   0x3   :  { %247 = vmatprep.mubr.msk.f32.mxu0 %vm31_vm1, %v13_v1  ;;  %v17_v3 = vld [vmem:[%s351_s1 + $0x20] sm:$0xff]  ;;  %246 = vmatpush3.msk.msra.mxu0 %vm38_vm0, %v12_v0 }
   0x4   :  { %7 = vsyncpa [#allocation3], 0  ;;  %248 = vmatmul.mubr.msk.f32.vlgmr.msra.gmra.mrb[0].mxu0 %vm31_vm1, %v14_v2  ;;  %23 = vperm.xlu0 %265, %v17_v3   ;;  %v18_v5 = vld [vmem:[%s351_s1 + $0x28] sm:$0xff]  ;;  %v20_v6 = vld [vmem:[%s351_s1 + $0x38] sm:$0x1]  ;;  %v292_v7 = vmov 0.0|0.0  }
   0x5   :  { %266 = vset.pattern.permute.xlu1 %v291_v4  ;;  %257 = vmatprep.subr.bf16.mxu1 %v292_v7  ;;  %vm293_vm2 = vmmov 0   ;;  %v294_v8 = vmov 0.0   ;;  %v19_v9 = vld [vmem:[%s351_s1 + $0x30] sm:$0xff]  ;;  %v16_v10 = vld [vmem:[%s351_s1 + $0x18] sm:$0xff]  ;;  %vm124_vm3 = vcmask 130048   ;;  %vm205_vm4 = vcmask 64512  }
   0x6   :  { %254 = vmatprep.mubr.msk.f32.mxu1 %vm293_vm2, %v294_v8  ;;  %121 = vperm.xlu1 %266, %v19_v9   ;;  %v15_v20 = vld [vmem:[%s351_s1 + $0x10] sm:$0xff]  ;;  %s295_s26 = smov [#allocation2]   ;;  %vm219_vm5 = vcmask 57344  }
   0x7   :  { %s227_s27 = sshll.u32 %s295_s26, 4  ;;  %s228_s27 = int_to_ptr.vmem [resolvable:$true] %s227_s27 }
   0x8   :  { %28 = vperm.xlu0 %265, %v18_v5   ;;  %s267_s1 = scalar_lea.vmem %s228_s27, 16  ;;  %s271_s28 = scalar_lea.vmem %s228_s27, 32 }
   0x9   :  { %p268_p0 = scmp.ne.s32.totalorder %s228_s27, %s267_s1  ;;  %p272_p1 = scmp.lt.s32.totalorder %s228_s27, %s228_s27 }
   0xa   :  { %201 = vperm.xlu1 %266, %v16_v10   ;;  %p273_p2 = scmp.lt.s32.totalorder %s271_s28, %s267_s1 }
   0xc   :  { %215 = vperm.xlu0 %265, %v20_v6   ;;  %p274_p3 = por %p273_p2, %p272_p1 }
   0xe   :  { %p275_p4 = pnand %p274_p3, %p268_p0 }
  0x83   :  { %v24_v11 = vpop.permute.xlu0 %23 }
  0x85   :  { %v122_v21 = vpop.permute.xlu1 %121 }
  0x87   :  { %v29_v12 = vpop.permute.xlu0 %28 }
  0x89   :  { %v202_v26 = vpop.permute.xlu1 %201 }
  0x8b   :  { %v216_v35 = vpop.permute.xlu0 %215 }
  0xd7   :  { %v249_v13 = vpop.f32.mrb[0].mxu0 }
  0xd8   :  { %v114_v14 = vadd.f32 %v249_v13, %v29_v12  ;;  %v108_v15 = vpop.f32.mrb[1].mxu0 }
  0xd9   :  { %v109_v16 = vadd.f32 %v108_v15, %v24_v11 }
  0xda   :  { %v118_v17 = vmax.f32 %v114_v14, 0.0 }
  0xdb   :  { %v117_v18 = vmax.f32 %v109_v16, 0.0 }
  0xdd   :  { %v258_v19 = vpack.c.bf16 %v118_v17, %v117_v18 }
  0xdf   :  { %259 = vmatpush3.bf16.msra.mxu1 %v258_v19 }
  0xe2   :  { %255 = vmatmul.mubr.msk.f32.vlgmr.msra.gmra.mrb[0].mxu1 %vm124_vm3, %v15_v20 }
 0x1b5   :  { %v194_v22 = vpop.f32.mrb[0].mxu1 }
 0x1b6   :  { %v195_v23 = vadd.f32 %v194_v22, %v122_v21  ;;  %v256_v24 = vpop.f32.mrb[1].mxu1 }
 0x1b8   :  { %v198_v25 = vmax.f32 %v195_v23, 0.0 }
 0x1ba   :  { %v204_v27 = vmul.f32 %v202_v26, %v198_v25 }
 0x1bc   :  { %v206_v28 = vsel %vm205_vm4, %v204_v27, 0.0 }
 0x1bd   :  { %v207_v29 = vrot.slane %v206_v28, 4 }
 0x1bf   :  { %v208_v30 = vadd.f32 %v207_v29, %v206_v28 }
 0x1c1   :  { %v209_v31 = vrot.slane %v208_v30, 2 }
 0x1c3   :  { %v210_v32 = vadd.f32 %v209_v31, %v208_v30 }
 0x1c5   :  { %v211_v33 = vrot.slane %v210_v32, 1 }
 0x1c7   :  { %v212_v34 = vadd.f32 %v211_v33, %v210_v32 }
 0x1c9   :  { %v218_v36 = vadd.f32 %v216_v35, %v212_v34 }
 0x1cb   :  { %220 = vst.msk [vmem:[#allocation2] sm:$0x1] %vm219_vm5, %v218_v36 }
 0x1cc   :  { %278 = shalt.err (!%p275_p4)
}
 0x1cd   :  { %s279_s3 = scalar_lea.hbm %s352_s2, 16 }
 0x1ce   :  { %p280_p5 = scmp.ne.s32.totalorder %s352_s2, %s279_s3  ;;  %p283_p6 = scmp.lt.u32.totalorder %s279_s3, %s352_s2 }
 0x1d0   :  { %p285_p7 = pnand %p283_p6, %p280_p5 }
 0x1d2   :  { %288 = shalt.err (!%p285_p7)
}
 0x1d3   :  { %230 = dma.vmem_to_hbm [thread:$0]  %s228_s27, 16, %s352_s2, [#allocation3]  }
 0x1d4   :  { %289 = dma.done.wait [#allocation3], 16  }
 0x1d5   :  { %290 = vsyncadd [#allocation3], 4294967280 }
 0x1d6   :  { %234 = vsyncpa [#allocation3], 1 }

</bundles_post_ra>
